<compile_context>
chip_gen: v7x
topology: tpu7x:2x2x1
jax: 0.10.0
libtpu: 0.0.40
codegen_flags: <defaults>
</compile_context>

<pallas_src>
import functools

import jax
import jax.numpy as jnp
from jax.experimental import pallas as pl
from jax.experimental.pallas import tpu as pltpu

INPUT_SIZE = 40
HIDDEN = (512, 512)
OUTPUT_SIZE = 1
LN_EPS = 1e-5
LEAKY_SLOPE = 0.01  # PyTorch nn.LeakyReLU default


def _layernorm(h, gamma, beta):
    # One-pass mean / variance (E[x^2] - mu^2): avoids a second (h - mu) elementwise
    # pass over the TBx512 tile before squaring.
    mu = jnp.mean(h, axis=-1, keepdims=True)
    ex2 = jnp.mean(h * h, axis=-1, keepdims=True)
    var = ex2 - mu * mu
    return (h - mu) * jax.lax.rsqrt(var + LN_EPS) * gamma + beta


def _leaky_relu(h):
    # max(h, 0.01*h) == LeakyReLU(0.01)(h); cheaper than where(cmp, h, 0.01*h).
    return jnp.maximum(h, LEAKY_SLOPE * h)


def mlp_kernel(x_ref,
               w1_ref, b1_ref, g1_ref, be1_ref,
               w2_ref, b2_ref, g2_ref, be2_ref,
               w3_ref, b3_ref,
               o_ref):
    # --- block 1: Linear -> LayerNorm -> LeakyReLU -> (Dropout: identity in eval) ---
    x = x_ref[...]                                              # bf16, cast at boundary
    h = jnp.dot(x, w1_ref[...], preferred_element_type=jnp.float32) + b1_ref[...]
    h = _layernorm(h, g1_ref[...], be1_ref[...])                # f32 VPU/XLU math
    h = _leaky_relu(h)
    # TODO(synk): nn.Dropout(0.3) is identity in eval mode; training-mode RNG masking not implemented.

    # --- block 2 ---
    h2 = jnp.dot(h.astype(jnp.bfloat16), w2_ref[...],
                 preferred_element_type=jnp.float32) + b2_ref[...]
    h2 = _layernorm(h2, g2_ref[...], be2_ref[...])
    h2 = _leaky_relu(h2)

    # --- head: 512 -> 1 as VPU multiply + XLU lane reduction (w3 stored (1, 512)) ---
    logits = jnp.sum(h2 * w3_ref[...], axis=-1, keepdims=True) + b3_ref[...]  # (TB, 1)
    # Lane-dense store: transpose the (TB, 1) column to a (1, TB) row (cheap XLU) so
    # the output block fills all 128 lanes instead of 1 (unmasked vst).
    logits_row = logits.T                                                     # (1, TB)
    probs_row = 1.0 / (1.0 + jnp.exp(-logits_row))
    o_ref[...] = probs_row[:, None, :]                                        # (1, 1, TB)


def init_params(key):
    """Deterministic init matching PyTorch default shapes/semantics (f32 master copy)."""
    ks = jax.random.split(key, 6)

    def linear_init(kw, kb, fan_in, w_shape, b_shape):
        bound = 1.0 / jnp.sqrt(jnp.float32(fan_in))
        w = jax.random.uniform(kw, w_shape, jnp.float32, -bound, bound)
        b = jax.random.uniform(kb, b_shape, jnp.float32, -bound, bound)
        return w, b

    # w1, w2 stored (in, out) so the kernel does x @ W; w3 stored (1, 512)
    # (PyTorch (out, in) layout) because the head is a multiply + lane-reduce.
    w1, b1 = linear_init(ks[0], ks[1], INPUT_SIZE, (INPUT_SIZE, HIDDEN[0]), (1, HIDDEN[0]))
    w2, b2 = linear_init(ks[2], ks[3], HIDDEN[0], (HIDDEN[0], HIDDEN[1]), (1, HIDDEN[1]))
    w3, b3 = linear_init(ks[4], ks[5], HIDDEN[1], (OUTPUT_SIZE, HIDDEN[1]), (1, OUTPUT_SIZE))

    g1 = jnp.ones((1, HIDDEN[0]), jnp.float32)
    be1 = jnp.zeros((1, HIDDEN[0]), jnp.float32)
    g2 = jnp.ones((1, HIDDEN[1]), jnp.float32)
    be2 = jnp.zeros((1, HIDDEN[1]), jnp.float32)

    return (w1, b1, g1, be1, w2, b2, g2, be2, w3, b3)


def _round_up(n, m):
    return ((n + m - 1) // m) * m


def _choose_tile(B, tb):
    """Batch rows per grid step.

    - default tb=512: multiple of 256 (fills v6e/v7x 256-wide MXU passes) and of 128
      (v5e), large enough to amortise the ~0.35 us per-grid-step overhead.
    - single-tile batches >= 512 rows are split in two so the "parallel" batch axis
      feeds both v7x TensorCores.
    - multiples of 16 keep the streamed bf16 x tile sublane-pack friendly.
    """
    B8 = _round_up(B, 8)
    if B8 <= tb:
        if B8 >= 512:
            return _round_up((B8 + 1) // 2, 16)
        return B8
    return max(16, (tb // 16) * 16)


@functools.partial(jax.jit, static_argnames=("tb",))
def mlp_forward(x, params, *, tb=512):
    """Fused MLP forward. `tb` = target batch rows per grid step (sweep 512-1024 for
    large batches; keep it a multiple of 256 on v6e/v7x, 128 on v5e)."""
    w1, b1, g1, be1, w2, b2, g2, be2, w3, b3 = params
    B = x.shape[0]

    TB = _choose_tile(B, tb)
    B_pad = _round_up(B, TB)

    # bf16 at the pallas_call boundary: halves the only per-step streamed DMA (x tile)
    # and removes the per-tile f32->bf16 pack inside the kernel.
    x = x.astype(jnp.bfloat16)
    if B_pad != B:
        x = jnp.pad(x, ((0, B_pad - B), (0, 0)))
    num_tiles = B_pad // TB

    # bf16 weights for the MXU matmuls (f32 accumulation inside the kernel).
    w1b = w1.astype(jnp.bfloat16)
    w2b = w2.astype(jnp.bfloat16)

    def resident(arr):
        # Whole array, same block index every grid step -> stays VMEM-resident
        # (no re-DMA across batch tiles).
        return pl.BlockSpec(arr.shape, lambda i, nd=arr.ndim: (0,) * nd)

    in_specs = [
        pl.BlockSpec((TB, INPUT_SIZE), lambda i: (i, 0)),   # x: batch-tiled, streamed
        resident(w1b), resident(b1), resident(g1), resident(be1),
        resident(w2b), resident(b2), resident(g2), resident(be2),
        resident(w3), resident(b3),
    ]
    # Lane-dense output: one (1, TB) row per tile (batch on lanes), unmasked stores.
    out_specs = pl.BlockSpec((1, 1, TB), lambda i: (i, 0, 0))

    out = pl.pallas_call(
        mlp_kernel,
        out_shape=jax.ShapeDtypeStruct((num_tiles, 1, TB), jnp.float32),
        grid=(num_tiles,),
        in_specs=in_specs,
        out_specs=out_specs,
        compiler_params=pltpu.CompilerParams(
            dimension_semantics=("parallel",),
            vmem_limit_bytes=32 << 20,
        ),
    )(x, w1b, b1, g1, be1, w2b, b2, g2, be2, w3, b3)

    # (num_tiles, 1, TB) row-major flatten restores original batch order; drop padding.
    return out.reshape(B_pad)[:B].reshape(B, OUTPUT_SIZE)


if __name__ == "__main__":
    key = jax.random.PRNGKey(0)
    k_param, k_x = jax.random.split(key)

    params = init_params(k_param)

    batch = 8
    x = jax.random.normal(k_x, (batch, INPUT_SIZE), jnp.float32)

    out = jax.block_until_ready(mlp_forward(x, params))

    # sanity: shape and sigmoid range
    assert out.shape == (batch, OUTPUT_SIZE), out.shape
    assert bool(jnp.all((out >= 0.0) & (out <= 1.0)))

    # cross-check against pure-JAX references
    w1, b1, g1, be1, w2, b2, g2, be2, w3, b3 = params

    def _ln(h, g, b):
        mu = h.mean(-1, keepdims=True)
        var = ((h - mu) ** 2).mean(-1, keepdims=True)
        return (h - mu) / jnp.sqrt(var + LN_EPS) * g + b

    def ref(xi, use_bf16):
        cast = (lambda a: a.astype(jnp.bfloat16)) if use_bf16 else (lambda a: a)
        h = jnp.dot(cast(xi), cast(w1), preferred_element_type=jnp.float32) + b1
        h = _ln(h, g1, be1)
        h = jnp.where(h >= 0, h, LEAKY_SLOPE * h)
        h = jnp.dot(cast(h), cast(w2), preferred_element_type=jnp.float32) + b2
        h = _ln(h, g2, be2)
        h = jnp.where(h >= 0, h, LEAKY_SLOPE * h)
        logits = jnp.sum(h * w3, axis=-1, keepdims=True) + b3
        return 1.0 / (1.0 + jnp.exp(-logits))

    ref_q = ref(x, True)      # quantization-matched (bf16 matmul inputs, f32 acc)
    ref_f32 = ref(x, False)   # full-f32 PyTorch semantics
    assert bool(jnp.allclose(out, ref_q, atol=2e-3, rtol=2e-3)), "mismatch vs bf16-matched ref"
    assert bool(jnp.allclose(out, ref_f32, atol=3e-2, rtol=3e-2)), "mismatch vs f32 ref"

    print("KERNEL_OK")
</pallas_src>

<mosaic_0001>
module attributes {stable_mosaic.version = 11 : i64} {
  func.func @mlp_kernel(%arg0: i32, %arg1: memref<8x40xbf16, #tpu.memory_space<vmem>>, %arg2: memref<40x512xbf16, #tpu.memory_space<vmem>>, %arg3: memref<1x512xf32, #tpu.memory_space<vmem>>, %arg4: memref<1x512xf32, #tpu.memory_space<vmem>>, %arg5: memref<1x512xf32, #tpu.memory_space<vmem>>, %arg6: memref<512x512xbf16, #tpu.memory_space<vmem>>, %arg7: memref<1x512xf32, #tpu.memory_space<vmem>>, %arg8: memref<1x512xf32, #tpu.memory_space<vmem>>, %arg9: memref<1x512xf32, #tpu.memory_space<vmem>>, %arg10: memref<1x512xf32, #tpu.memory_space<vmem>>, %arg11: memref<1x1xf32, #tpu.memory_space<vmem>>, %arg12: memref<1x1x8xf32, #tpu.memory_space<vmem>>) attributes {dimension_semantics = [#tpu.dimension_semantics<parallel>], iteration_bounds = array<i64: 1>, scalar_prefetch = 0 : i64, scratch_operands = 0 : i64, tpu.core_type = #tpu.core_type<tc>, window_params = [{transform_indices = @transform_0, window_bounds = array<i64: 8, 40>}, {pipeline_mode = #tpu.pipeline_mode<synchronous>, transform_indices = @transform_1, window_bounds = array<i64: 40, 512>}, {pipeline_mode = #tpu.pipeline_mode<synchronous>, transform_indices = @transform_2, window_bounds = array<i64: 1, 512>}, {pipeline_mode = #tpu.pipeline_mode<synchronous>, transform_indices = @transform_3, window_bounds = array<i64: 1, 512>}, {pipeline_mode = #tpu.pipeline_mode<synchronous>, transform_indices = @transform_4, window_bounds = array<i64: 1, 512>}, {pipeline_mode = #tpu.pipeline_mode<synchronous>, transform_indices = @transform_5, window_bounds = array<i64: 512, 512>}, {pipeline_mode = #tpu.pipeline_mode<synchronous>, transform_indices = @transform_6, window_bounds = array<i64: 1, 512>}, {pipeline_mode = #tpu.pipeline_mode<synchronous>, transform_indices = @transform_7, window_bounds = array<i64: 1, 512>}, {pipeline_mode = #tpu.pipeline_mode<synchronous>, transform_indices = @transform_8, window_bounds = array<i64: 1, 512>}, {pipeline_mode = #tpu.pipeline_mode<synchronous>, transform_indices = @transform_9, window_bounds = array<i64: 1, 512>}, {pipeline_mode = #tpu.pipeline_mode<synchronous>, transform_indices = @transform_10, window_bounds = array<i64: 1, 1>}, {transform_indices = @transform_11, window_bounds = array<i64: 1, 1, 8>}]} {
    %c0 = arith.constant 0 : index
    %c0_0 = arith.constant 0 : index
    %0 = vector.load %arg1[%c0, %c0_0] : memref<8x40xbf16, #tpu.memory_space<vmem>>, vector<8x40xbf16>
    %c0_1 = arith.constant 0 : index
    %c0_2 = arith.constant 0 : index
    %1 = vector.load %arg2[%c0_1, %c0_2] : memref<40x512xbf16, #tpu.memory_space<vmem>>, vector<40x512xbf16>
    %cst = arith.constant dense<0.000000e+00> : vector<8x512xf32>
    %2 = tpu.matmul %0, %1, %cst {dimension_numbers = #tpu.dot_dimension_numbers<[1], [0], [0], [1], [0, 0, 1, 1], [], []>} : vector<8x40xbf16>, vector<40x512xbf16>, vector<8x512xf32> -> vector<8x512xf32>
    %c0_3 = arith.constant 0 : index
    %c0_4 = arith.constant 0 : index
    %3 = vector.load %arg3[%c0_3, %c0_4] : memref<1x512xf32, #tpu.memory_space<vmem>>, vector<1x512xf32>
    %4 = vector.broadcast %3 : vector<1x512xf32> to vector<8x512xf32>
    %5 = arith.addf %2, %4 : vector<8x512xf32>
    %c0_5 = arith.constant 0 : index
    %c0_6 = arith.constant 0 : index
    %6 = vector.load %arg4[%c0_5, %c0_6] : memref<1x512xf32, #tpu.memory_space<vmem>>, vector<1x512xf32>
    %c0_7 = arith.constant 0 : index
    %c0_8 = arith.constant 0 : index
    %7 = vector.load %arg5[%c0_7, %c0_8] : memref<1x512xf32, #tpu.memory_space<vmem>>, vector<1x512xf32>
    %cst_9 = arith.constant dense<0.000000e+00> : vector<8xf32>
    %8 = vector.multi_reduction <add>, %5, %cst_9 [1] : vector<8x512xf32> to vector<8xf32>
    %9 = vector.shape_cast %8 : vector<8xf32> to vector<8x1xf32>
    %cst_10 = arith.constant 5.120000e+02 : f32
    %10 = vector.broadcast %cst_10 : f32 to vector<8x1xf32>
    %11 = arith.divf %9, %10 : vector<8x1xf32>
    %12 = arith.mulf %5, %5 : vector<8x512xf32>
    %cst_11 = arith.constant dense<0.000000e+00> : vector<8xf32>
    %13 = vector.multi_reduction <add>, %12, %cst_11 [1] : vector<8x512xf32> to vector<8xf32>
    %14 = vector.shape_cast %13 : vector<8xf32> to vector<8x1xf32>
    %cst_12 = arith.constant 5.120000e+02 : f32
    %15 = vector.broadcast %cst_12 : f32 to vector<8x1xf32>
    %16 = arith.divf %14, %15 : vector<8x1xf32>
    %17 = arith.mulf %11, %11 : vector<8x1xf32>
    %18 = arith.subf %16, %17 : vector<8x1xf32>
    %19 = vector.broadcast %11 : vector<8x1xf32> to vector<8x512xf32>
    %20 = arith.subf %5, %19 : vector<8x512xf32>
    %cst_13 = arith.constant 9.99999974E-6 : f32
    %21 = vector.broadcast %cst_13 : f32 to vector<8x1xf32>
    %22 = arith.addf %18, %21 : vector<8x1xf32>
    %23 = math.rsqrt %22 : vector<8x1xf32>
    %24 = vector.broadcast %23 : vector<8x1xf32> to vector<8x512xf32>
    %25 = arith.mulf %20, %24 : vector<8x512xf32>
    %26 = vector.broadcast %6 : vector<1x512xf32> to vector<8x512xf32>
    %27 = arith.mulf %25, %26 : vector<8x512xf32>
    %28 = vector.broadcast %7 : vector<1x512xf32> to vector<8x512xf32>
    %29 = arith.addf %27, %28 : vector<8x512xf32>
    %cst_14 = arith.constant 0.00999999977 : f32
    %30 = vector.broadcast %cst_14 : f32 to vector<8x512xf32>
    %31 = arith.mulf %30, %29 : vector<8x512xf32>
    %32 = arith.maximumf %29, %31 : vector<8x512xf32>
    %33 = arith.truncf %32 : vector<8x512xf32> to vector<8x512xbf16>
    %c0_15 = arith.constant 0 : index
    %c0_16 = arith.constant 0 : index
    %34 = vector.load %arg6[%c0_15, %c0_16] : memref<512x512xbf16, #tpu.memory_space<vmem>>, vector<512x512xbf16>
    %cst_17 = arith.constant dense<0.000000e+00> : vector<8x512xf32>
    %35 = tpu.matmul %33, %34, %cst_17 {dimension_numbers = #tpu.dot_dimension_numbers<[1], [0], [0], [1], [0, 0, 1, 1], [], []>} : vector<8x512xbf16>, vector<512x512xbf16>, vector<8x512xf32> -> vector<8x512xf32>
    %c0_18 = arith.constant 0 : index
    %c0_19 = arith.constant 0 : index
    %36 = vector.load %arg7[%c0_18, %c0_19] : memref<1x512xf32, #tpu.memory_space<vmem>>, vector<1x512xf32>
    %37 = vector.broadcast %36 : vector<1x512xf32> to vector<8x512xf32>
    %38 = arith.addf %35, %37 : vector<8x512xf32>
    %c0_20 = arith.constant 0 : index
    %c0_21 = arith.constant 0 : index
    %39 = vector.load %arg8[%c0_20, %c0_21] : memref<1x512xf32, #tpu.memory_space<vmem>>, vector<1x512xf32>
    %c0_22 = arith.constant 0 : index
    %c0_23 = arith.constant 0 : index
    %40 = vector.load %arg9[%c0_22, %c0_23] : memref<1x512xf32, #tpu.memory_space<vmem>>, vector<1x512xf32>
    %cst_24 = arith.constant dense<0.000000e+00> : vector<8xf32>
    %41 = vector.multi_reduction <add>, %38, %cst_24 [1] : vector<8x512xf32> to vector<8xf32>
    %42 = vector.shape_cast %41 : vector<8xf32> to vector<8x1xf32>
    %cst_25 = arith.constant 5.120000e+02 : f32
    %43 = vector.broadcast %cst_25 : f32 to vector<8x1xf32>
    %44 = arith.divf %42, %43 : vector<8x1xf32>
    %45 = arith.mulf %38, %38 : vector<8x512xf32>
    %cst_26 = arith.constant dense<0.000000e+00> : vector<8xf32>
    %46 = vector.multi_reduction <add>, %45, %cst_26 [1] : vector<8x512xf32> to vector<8xf32>
    %47 = vector.shape_cast %46 : vector<8xf32> to vector<8x1xf32>
    %cst_27 = arith.constant 5.120000e+02 : f32
    %48 = vector.broadcast %cst_27 : f32 to vector<8x1xf32>
    %49 = arith.divf %47, %48 : vector<8x1xf32>
    %50 = arith.mulf %44, %44 : vector<8x1xf32>
    %51 = arith.subf %49, %50 : vector<8x1xf32>
    %52 = vector.broadcast %44 : vector<8x1xf32> to vector<8x512xf32>
    %53 = arith.subf %38, %52 : vector<8x512xf32>
    %cst_28 = arith.constant 9.99999974E-6 : f32
    %54 = vector.broadcast %cst_28 : f32 to vector<8x1xf32>
    %55 = arith.addf %51, %54 : vector<8x1xf32>
    %56 = math.rsqrt %55 : vector<8x1xf32>
    %57 = vector.broadcast %56 : vector<8x1xf32> to vector<8x512xf32>
    %58 = arith.mulf %53, %57 : vector<8x512xf32>
    %59 = vector.broadcast %39 : vector<1x512xf32> to vector<8x512xf32>
    %60 = arith.mulf %58, %59 : vector<8x512xf32>
    %61 = vector.broadcast %40 : vector<1x512xf32> to vector<8x512xf32>
    %62 = arith.addf %60, %61 : vector<8x512xf32>
    %cst_29 = arith.constant 0.00999999977 : f32
    %63 = vector.broadcast %cst_29 : f32 to vector<8x512xf32>
    %64 = arith.mulf %63, %62 : vector<8x512xf32>
    %65 = arith.maximumf %62, %64 : vector<8x512xf32>
    %c0_30 = arith.constant 0 : index
    %c0_31 = arith.constant 0 : index
    %66 = vector.load %arg10[%c0_30, %c0_31] : memref<1x512xf32, #tpu.memory_space<vmem>>, vector<1x512xf32>
    %67 = vector.broadcast %66 : vector<1x512xf32> to vector<8x512xf32>
    %68 = arith.mulf %65, %67 : vector<8x512xf32>
    %cst_32 = arith.constant dense<0.000000e+00> : vector<8xf32>
    %69 = vector.multi_reduction <add>, %68, %cst_32 [1] : vector<8x512xf32> to vector<8xf32>
    %70 = vector.shape_cast %69 : vector<8xf32> to vector<8x1xf32>
    %c0_33 = arith.constant 0 : index
    %c0_34 = arith.constant 0 : index
    %71 = vector.load %arg11[%c0_33, %c0_34] : memref<1x1xf32, #tpu.memory_space<vmem>>, vector<1x1xf32>
    %72 = vector.broadcast %71 : vector<1x1xf32> to vector<8x1xf32>
    %73 = arith.addf %70, %72 : vector<8x1xf32>
    %74 = tpu.transpose %73, [1, 0] : vector<8x1xf32> -> vector<1x8xf32>
    %cst_35 = arith.constant 0.000000e+00 : f32
    %75 = vector.broadcast %cst_35 : f32 to vector<1x8xf32>
    %76 = arith.subf %75, %74 : vector<1x8xf32>
    %77 = math.exp %76 : vector<1x8xf32>
    %cst_36 = arith.constant 1.000000e+00 : f32
    %78 = vector.broadcast %cst_36 : f32 to vector<1x8xf32>
    %79 = arith.addf %78, %77 : vector<1x8xf32>
    %cst_37 = arith.constant 1.000000e+00 : f32
    %80 = vector.broadcast %cst_37 : f32 to vector<1x8xf32>
    %81 = arith.divf %80, %79 : vector<1x8xf32>
    %82 = vector.shape_cast %81 : vector<1x8xf32> to vector<1x1x8xf32>
    %c0_38 = arith.constant 0 : index
    %c0_39 = arith.constant 0 : index
    %c0_40 = arith.constant 0 : index
    %83 = vector.load %arg12[%c0_38, %c0_39, %c0_40] : memref<1x1x8xf32, #tpu.memory_space<vmem>>, vector<1x1x8xf32>
    tpu.vector_store %arg12[%c0_38, %c0_39, %c0_40], %82 {strides = array<i32>} : memref<1x1x8xf32, #tpu.memory_space<vmem>>, vector<1x1x8xf32>,
    return
  }
  func.func @transform_0(%arg0: i32) -> (i32, i32) {
    %c0_i32 = arith.constant 0 : i32
    %c0_i32_0 = arith.constant 0 : i32
    return %arg0, %c0_i32 : i32, i32
  }
  func.func @transform_1(%arg0: i32) -> (i32, i32) {
    %c0_i32 = arith.constant 0 : i32
    %c0_i32_0 = arith.constant 0 : i32
    %c0_i32_1 = arith.constant 0 : i32
    return %c0_i32, %c0_i32_0 : i32, i32
  }
  func.func @transform_2(%arg0: i32) -> (i32, i32) {
    %c0_i32 = arith.constant 0 : i32
    %c0_i32_0 = arith.constant 0 : i32
    %c0_i32_1 = arith.constant 0 : i32
    return %c0_i32, %c0_i32_0 : i32, i32
  }
  func.func @transform_3(%arg0: i32) -> (i32, i32) {
    %c0_i32 = arith.constant 0 : i32
    %c0_i32_0 = arith.constant 0 : i32
    %c0_i32_1 = arith.constant 0 : i32
    return %c0_i32, %c0_i32_0 : i32, i32
  }
  func.func @transform_4(%arg0: i32) -> (i32, i32) {
    %c0_i32 = arith.constant 0 : i32
    %c0_i32_0 = arith.constant 0 : i32
    %c0_i32_1 = arith.constant 0 : i32
    return %c0_i32, %c0_i32_0 : i32, i32
  }
  func.func @transform_5(%arg0: i32) -> (i32, i32) {
    %c0_i32 = arith.constant 0 : i32
    %c0_i32_0 = arith.constant 0 : i32
    %c0_i32_1 = arith.constant 0 : i32
    return %c0_i32, %c0_i32_0 : i32, i32
  }
  func.func @transform_6(%arg0: i32) -> (i32, i32) {
    %c0_i32 = arith.constant 0 : i32
    %c0_i32_0 = arith.constant 0 : i32
    %c0_i32_1 = arith.constant 0 : i32
    return %c0_i32, %c0_i32_0 : i32, i32
  }
  func.func @transform_7(%arg0: i32) -> (i32, i32) {
    %c0_i32 = arith.constant 0 : i32
    %c0_i32_0 = arith.constant 0 : i32
    %c0_i32_1 = arith.constant 0 : i32
    return %c0_i32, %c0_i32_0 : i32, i32
  }
  func.func @transform_8(%arg0: i32) -> (i32, i32) {
    %c0_i32 = arith.constant 0 : i32
    %c0_i32_0 = arith.constant 0 : i32
    %c0_i32_1 = arith.constant 0 : i32
    return %c0_i32, %c0_i32_0 : i32, i32
  }
  func.func @transform_9(%arg0: i32) -> (i32, i32) {
    %c0_i32 = arith.constant 0 : i32
    %c0_i32_0 = arith.constant 0 : i32
    %c0_i32_1 = arith.constant 0 : i32
    return %c0_i32, %c0_i32_0 : i32, i32
  }
  func.func @transform_10(%arg0: i32) -> (i32, i32) {
    %c0_i32 = arith.constant 0 : i32
    %c0_i32_0 = arith.constant 0 : i32
    %c0_i32_1 = arith.constant 0 : i32
    return %c0_i32, %c0_i32_0 : i32, i32
  }
  func.func @transform_11(%arg0: i32) -> (i32, i32, i32) {
    %c0_i32 = arith.constant 0 : i32
    %c0_i32_0 = arith.constant 0 : i32
    %c0_i32_1 = arith.constant 0 : i32
    return %arg0, %c0_i32, %c0_i32_0 : i32, i32, i32
  }
}

</mosaic_0001>

<bundles_post_ra>
// kernel: mlp_forward.1
= control target key start
LH: loop header
LB: loop body
LE: loop exit
PB: predicated region body
PF: predicated region fallthrough
CT: control target
= control target key end

     0   :  { %s2431_s0 = inlined_call_operand.vmem [shape: bf16[8,40], index: 0, kind: input, shape index: {}]   ;;  %s2432_s1 = inlined_call_operand.vmem [shape: bf16[40,512], index: 1, kind: input, shape index: {}]   ;;  %s2433_s2 = inlined_call_operand.vmem [shape: f32[1,512], index: 2, kind: input, shape index: {}]   ;;  %s2434_s3 = inlined_call_operand.vmem [shape: f32[1,512], index: 3, kind: input, shape index: {}]   ;;  %s2435_s4 = inlined_call_operand.vmem [shape: f32[1,512], index: 4, kind: input, shape index: {}]   ;;  %s2436_s5 = inlined_call_operand.vmem [shape: bf16[512,512], index: 5, kind: input, shape index: {}]   ;;  %s2437_s6 = inlined_call_operand.vmem [shape: f32[1,512], index: 6, kind: input, shape index: {}]   ;;  %s2438_s7 = inlined_call_operand.vmem [shape: f32[1,512], index: 7, kind: input, shape index: {}]   ;;  %s2439_s8 = inlined_call_operand.vmem [shape: f32[1,512], index: 8, kind: input, shape index: {}]   ;;  %s2440_s9 = inlined_call_operand.vmem [shape: f32[1,512], index: 9, kind: input, shape index: {}]   ;;  %s2441_s10 = inlined_call_operand.<no memory space> [shape: f32[1,1], index: 10, kind: input, shape index: {}]   ;;  %s2442_s11 = inlined_call_operand.hbm [shape: f32[1,1,8], index: 11, kind: output, shape index: {}]  }
   0x1   :  { %v16_v0 = vstv %s2441_s10 }
   0x2   :  { %17 = vst [vmem:[#allocation2] sm:$0x1] %v16_v0 }
   0x3   :  { %v1612_v1 = vld [vmem:[%s2432_s1 + $0x4] ss:$16 sps:$4 sm:$0xff]   ;;  %v1614_v2 = vld [vmem:[%s2432_s1 + $0xc] ss:$16 sps:$4 sm:$0xff]   ;;  %v1852_v3 = vmov 0   ;;  %vm129_vm0 = vcmask 1043456  }
   0x4   :  { %174 = vmatprep.mubr.bf16.mxu0 %v1852_v3  ;;  %215 = vmatprep.mubr.bf16.mxu1 %v1852_v3  ;;  %v1616_v4 = vld [vmem:[%s2432_s1] ss:$16 sps:$4 sm:$0xff]   ;;  %v1617_v5 = vld [vmem:[%s2432_s1 + $0x8] ss:$16 sps:$4 sm:$0xff]   ;;  %v1618_v6 = vld [vmem:[%s2432_s1 + $0x24] ss:$16 sps:$4 sm:$0xff]  }
   0x5   :  { %142 = vmatprep.subr.bf16.mxu0 %v1612_v1  ;;  %183 = vmatprep.subr.bf16.mxu1 %v1614_v2  ;;  %v1620_v7 = vld [vmem:[%s2432_s1 + $0x2c] ss:$16 sps:$4 sm:$0xff]   ;;  %v1622_v8 = vld [vmem:[%s2432_s1 + $0x20] ss:$16 sps:$4 sm:$0xff]   ;;  %v1623_v9 = vld [vmem:[%s2432_s1 + $0x28] ss:$16 sps:$4 sm:$0xff]  }
   0x6   :  { %143 = vmatpush1.bf16.msra.mxu0 %v1616_v4  ;;  %184 = vmatpush1.bf16.msra.mxu1 %v1617_v5  ;;  %v51_v10 = vld [vmem:[%s2432_s1 + $0x40] sm:$0xff]  ;;  %v52_v11 = vld [vmem:[%s2432_s1 + $0x48] sm:$0xff]  ;;  %vm125_vm1 = vcmask 326656  }
   0x7   :  { %144 = vmatprep.subr.bf16.mxu0 %v1618_v6  ;;  %185 = vmatprep.subr.bf16.mxu1 %v1620_v7  ;;  %v1461_v12 = vcombine.high %v51_v10, %v51_v10  ;;  %v1463_v13 = vcombine.high %v52_v11, %v52_v11  ;;  %v1460_v14 = vcombine.low %v51_v10, %v51_v10  ;;  %v42_v18 = vld [vmem:[%s2431_s0] sm:$0xf] }
   0x8   :  { %v1462_v15 = vcombine.low %v52_v11, %v52_v11 }
   0x9   :  { %v131_v16 = vsel %vm129_vm0, %v1460_v14, 0 }
   0xa   :  { %145 = vmatpush1.bf16.msra.mxu0 %v1622_v8  ;;  %186 = vmatpush1.bf16.msra.mxu1 %v1623_v9  ;;  %v137_v17 = vsel %vm129_vm0, %v1462_v15, 0 }
   0xb   :  { %1464 = vmatprep.subr.msk.bf16.mxu0 %vm129_vm0, %v1461_v12  ;;  %1466 = vmatprep.subr.msk.bf16.mxu1 %vm129_vm0, %v1463_v13 }
   0xe   :  { %147 = vmatpush1.bf16.msra.mxu0 %v131_v16  ;;  %188 = vmatpush1.bf16.msra.mxu1 %v137_v17 }
  0x11   :  { %1465 = vmatmul.mubr.msk.bf16.vlgmr.msra.gmra.mrb[0].mxu0 %vm125_vm1, %v42_v18  ;;  %1467 = vmatmul.mubr.msk.bf16.vlgmr.msra.gmra.mrb[0].mxu1 %vm125_vm1, %v42_v18 }
  0x12   :  { %18 = vsyncpa [#allocation4], 0  ;;  %v1628_v19 = vld [vmem:[%s2436_s5] ss:$16 sps:$4 sm:$0xff]   ;;  %v1630_v20 = vld [vmem:[%s2436_s5 + $0x4] ss:$16 sps:$4 sm:$0xff]   ;;  %v55_v51 = vlaneseq }
  0x13   :  { %v1631_v21 = vld [vmem:[%s2436_s5 + $0x8] ss:$16 sps:$4 sm:$0xff]   ;;  %v1633_v22 = vld [vmem:[%s2436_s5 + $0xc] ss:$16 sps:$4 sm:$0xff]   ;;  %v1636_v23 = vld [vmem:[%s2436_s5 + $0x24] ss:$16 sps:$4 sm:$0xff]   ;;  %1107 = vmatprep.subr.bf16.mxu0 %v1630_v20 }
  0x14   :  { %v1639_v24 = vld [vmem:[%s2436_s5 + $0x2c] ss:$16 sps:$4 sm:$0xff]   ;;  %1189 = vmatprep.subr.bf16.mxu1 %v1633_v22  ;;  %1108 = vmatpush1.bf16.msra.mxu0 %v1628_v19  ;;  %v1634_v25 = vld [vmem:[%s2436_s5 + $0x20] ss:$16 sps:$4 sm:$0xff]   ;;  %v1637_v26 = vld [vmem:[%s2436_s5 + $0x28] ss:$16 sps:$4 sm:$0xff]  }
  0x15   :  { %1190 = vmatpush1.bf16.msra.mxu1 %v1631_v21  ;;  %1109 = vmatprep.subr.bf16.mxu0 %v1636_v23  ;;  %v1642_v27 = vld [vmem:[%s2436_s5 + $0x44] ss:$16 sps:$4 sm:$0xff]   ;;  %v1645_v28 = vld [vmem:[%s2436_s5 + $0x4c] ss:$16 sps:$4 sm:$0xff]   ;;  %v1640_v29 = vld [vmem:[%s2436_s5 + $0x40] ss:$16 sps:$4 sm:$0xff]  }
  0x16   :  { %1191 = vmatprep.subr.bf16.mxu1 %v1639_v24  ;;  %v1643_v30 = vld [vmem:[%s2436_s5 + $0x48] ss:$16 sps:$4 sm:$0xff]   ;;  %v1648_v31 = vld [vmem:[%s2436_s5 + $0x64] ss:$16 sps:$4 sm:$0xff]   ;;  %v1651_v32 = vld [vmem:[%s2436_s5 + $0x6c] ss:$16 sps:$4 sm:$0xff]  }
  0x17   :  { %v1646_v33 = vld [vmem:[%s2436_s5 + $0x60] ss:$16 sps:$4 sm:$0xff]   ;;  %v1649_v34 = vld [vmem:[%s2436_s5 + $0x68] ss:$16 sps:$4 sm:$0xff]   ;;  %v1654_v35 = vld [vmem:[%s2436_s5 + $0x84] ss:$16 sps:$4 sm:$0xff]  }
  0x18   :  { %1110 = vmatpush1.bf16.msra.mxu0 %v1634_v25  ;;  %v1657_v36 = vld [vmem:[%s2436_s5 + $0x8c] ss:$16 sps:$4 sm:$0xff]   ;;  %v1652_v37 = vld [vmem:[%s2436_s5 + $0x80] ss:$16 sps:$4 sm:$0xff]   ;;  %v1655_v38 = vld [vmem:[%s2436_s5 + $0x88] ss:$16 sps:$4 sm:$0xff]  }
  0x19   :  { %1192 = vmatpush1.bf16.msra.mxu1 %v1637_v26  ;;  %1111 = vmatprep.subr.bf16.mxu0 %v1642_v27  ;;  %v1660_v39 = vld [vmem:[%s2436_s5 + $0xa4] ss:$16 sps:$4 sm:$0xff]   ;;  %v1663_v40 = vld [vmem:[%s2436_s5 + $0xac] ss:$16 sps:$4 sm:$0xff]   ;;  %v1658_v41 = vld [vmem:[%s2436_s5 + $0xa0] ss:$16 sps:$4 sm:$0xff]  }
  0x1a   :  { %1193 = vmatprep.subr.bf16.mxu1 %v1645_v28  ;;  %v1661_v42 = vld [vmem:[%s2436_s5 + $0xa8] ss:$16 sps:$4 sm:$0xff]   ;;  %v1666_v43 = vld [vmem:[%s2436_s5 + $0xc4] ss:$16 sps:$4 sm:$0xff]   ;;  %v1669_v44 = vld [vmem:[%s2436_s5 + $0xcc] ss:$16 sps:$4 sm:$0xff]  }
  0x1b   :  { %v1664_v45 = vld [vmem:[%s2436_s5 + $0xc0] ss:$16 sps:$4 sm:$0xff]   ;;  %v1667_v46 = vld [vmem:[%s2436_s5 + $0xc8] ss:$16 sps:$4 sm:$0xff]   ;;  %v1672_v47 = vld [vmem:[%s2436_s5 + $0xe4] ss:$16 sps:$4 sm:$0xff]  }
  0x1c   :  { %1112 = vmatpush1.bf16.msra.mxu0 %v1640_v29  ;;  %v1675_v48 = vld [vmem:[%s2436_s5 + $0xec] ss:$16 sps:$4 sm:$0xff]   ;;  %v1670_v49 = vld [vmem:[%s2436_s5 + $0xe0] ss:$16 sps:$4 sm:$0xff]   ;;  %v1673_v50 = vld [vmem:[%s2436_s5 + $0xe8] ss:$16 sps:$4 sm:$0xff]  }
  0x1d   :  { %1194 = vmatpush1.bf16.msra.mxu1 %v1643_v30  ;;  %1113 = vmatprep.subr.bf16.mxu0 %v1648_v31  ;;  %v56_v52 = vshrl.u32 %v55_v51, 7  ;;  %v53_v55 = vld [vmem:[%s2433_s2] sm:$0xf]  ;;  %v1678_v20 = vld [vmem:[%s2436_s5 + $0x104] ss:$16 sps:$4 sm:$0xff]   ;;  %vm1436_vm2 = vcmask 57344  }
  0x1e   :  { %1195 = vmatprep.subr.bf16.mxu1 %v1651_v32  ;;  %v1681_v21 = vld [vmem:[%s2436_s5 + $0x10c] ss:$16 sps:$4 sm:$0xff]   ;;  %v1676_v22 = vld [vmem:[%s2436_s5 + $0x100] ss:$16 sps:$4 sm:$0xff]   ;;  %v1679_v23 = vld [vmem:[%s2436_s5 + $0x108] ss:$16 sps:$4 sm:$0xff]  }
  0x1f   :  { %v2046_v53 = vsub.s32 0, %v56_v52  ;;  %v2048_v54 = vsub.s32 2, %v56_v52  ;;  %v2053_v56 = vsub.s32 1, %v56_v52  ;;  %v2058_v60 = vsub.s32 3, %v56_v52  ;;  %v1684_v24 = vld [vmem:[%s2436_s5 + $0x124] ss:$16 sps:$4 sm:$0xff]  }
  0x20   :  { %1114 = vmatpush1.bf16.msra.mxu0 %v1646_v33  ;;  %v1687_v25 = vld [vmem:[%s2436_s5 + $0x12c] ss:$16 sps:$4 sm:$0xff]   ;;  %v1682_v26 = vld [vmem:[%s2436_s5 + $0x120] ss:$16 sps:$4 sm:$0xff]   ;;  %v1685_v27 = vld [vmem:[%s2436_s5 + $0x128] ss:$16 sps:$4 sm:$0xff]  }
  0x21   :  { %1196 = vmatpush1.bf16.msra.mxu1 %v1649_v34  ;;  %1115 = vmatprep.subr.bf16.mxu0 %v1654_v35  ;;  %v58_v57 = vrot.slane %v53_v55, %v2046_v53  ;;  %v66_v58 = vrot.slane %v53_v55, %v2048_v54  ;;  %v62_v59 = vrot.slane %v53_v55, %v2053_v56  ;;  %v1690_v28 = vld [vmem:[%s2436_s5 + $0x144] ss:$16 sps:$4 sm:$0xff]   ;;  %v1693_v29 = vld [vmem:[%s2436_s5 + $0x14c] ss:$16 sps:$4 sm:$0xff]   ;;  %v1688_v30 = vld [vmem:[%s2436_s5 + $0x140] ss:$16 sps:$4 sm:$0xff]  }
  0x22   :  { %1197 = vmatprep.subr.bf16.mxu1 %v1657_v36  ;;  %v70_v4 = vrot.slane %v53_v55, %v2058_v60  ;;  %v1691_v31 = vld [vmem:[%s2436_s5 + $0x148] ss:$16 sps:$4 sm:$0xff]   ;;  %v1694_v32 = vld [vmem:[%s2436_s5 + $0x160] ss:$16 sps:$4 sm:$0xff]   ;;  %v1696_v33 = vld [vmem:[%s2436_s5 + $0x164] ss:$16 sps:$4 sm:$0xff]  }
  0x23   :  { %v1697_v34 = vld [vmem:[%s2436_s5 + $0x168] ss:$16 sps:$4 sm:$0xff]   ;;  %v1699_v35 = vld [vmem:[%s2436_s5 + $0x16c] ss:$16 sps:$4 sm:$0xff]   ;;  %v1702_v36 = vld [vmem:[%s2436_s5 + $0x184] ss:$16 sps:$4 sm:$0xff]  }
  0x24   :  { %1116 = vmatpush1.bf16.msra.mxu0 %v1652_v37  ;;  %v1705_v37 = vld [vmem:[%s2436_s5 + $0x18c] ss:$16 sps:$4 sm:$0xff]   ;;  %v1721_v51 = vld [vmem:[%s2436_s5 + $0x1e8] ss:$16 sps:$4 sm:$0xff]   ;;  %v1726_v52 = vld [vmem:[%s2436_s5 + $0x204] ss:$16 sps:$4 sm:$0xff]  }
  0x25   :  { %1198 = vmatpush1.bf16.msra.mxu1 %v1655_v38  ;;  %1117 = vmatprep.subr.bf16.mxu0 %v1660_v39  ;;  %v1700_v38 = vld [vmem:[%s2436_s5 + $0x180] ss:$16 sps:$4 sm:$0xff]   ;;  %v1703_v39 = vld [vmem:[%s2436_s5 + $0x188] ss:$16 sps:$4 sm:$0xff]   ;;  %v1729_v55 = vld [vmem:[%s2436_s5 + $0x20c] ss:$16 sps:$4 sm:$0xff]  }
  0x26   :  { %1199 = vmatprep.subr.bf16.mxu1 %v1663_v40  ;;  %v1708_v40 = vld [vmem:[%s2436_s5 + $0x1a4] ss:$16 sps:$4 sm:$0xff]  }
  0x28   :  { %1118 = vmatpush1.bf16.msra.mxu0 %v1658_v41  ;;  %v1711_v41 = vld [vmem:[%s2436_s5 + $0x1ac] ss:$16 sps:$4 sm:$0xff]  }
  0x29   :  { %1200 = vmatpush1.bf16.msra.mxu1 %v1661_v42  ;;  %1119 = vmatprep.subr.bf16.mxu0 %v1666_v43  ;;  %v1706_v42 = vld [vmem:[%s2436_s5 + $0x1a0] ss:$16 sps:$4 sm:$0xff]   ;;  %v1709_v43 = vld [vmem:[%s2436_s5 + $0x1a8] ss:$16 sps:$4 sm:$0xff]  }
  0x2a   :  { %1201 = vmatprep.subr.bf16.mxu1 %v1669_v44  ;;  %v1714_v44 = vld [vmem:[%s2436_s5 + $0x1c4] ss:$16 sps:$4 sm:$0xff]  }
  0x2c   :  { %1120 = vmatpush1.bf16.msra.mxu0 %v1664_v45  ;;  %v1717_v45 = vld [vmem:[%s2436_s5 + $0x1cc] ss:$16 sps:$4 sm:$0xff]  }
  0x2d   :  { %1202 = vmatpush1.bf16.msra.mxu1 %v1667_v46  ;;  %1121 = vmatprep.subr.bf16.mxu0 %v1672_v47  ;;  %v1712_v46 = vld [vmem:[%s2436_s5 + $0x1c0] ss:$16 sps:$4 sm:$0xff]   ;;  %v1715_v47 = vld [vmem:[%s2436_s5 + $0x1c8] ss:$16 sps:$4 sm:$0xff]  }
  0x2e   :  { %1203 = vmatprep.subr.bf16.mxu1 %v1675_v48  ;;  %v1720_v48 = vld [vmem:[%s2436_s5 + $0x1e4] ss:$16 sps:$4 sm:$0xff]  }
  0x30   :  { %1122 = vmatpush1.bf16.msra.mxu0 %v1670_v49  ;;  %v1723_v49 = vld [vmem:[%s2436_s5 + $0x1ec] ss:$16 sps:$4 sm:$0xff]  }
  0x31   :  { %1204 = vmatpush1.bf16.msra.mxu1 %v1673_v50  ;;  %1123 = vmatprep.subr.bf16.mxu0 %v1678_v20  ;;  %v1718_v50 = vld [vmem:[%s2436_s5 + $0x1e0] ss:$16 sps:$4 sm:$0xff]  }
  0x32   :  { %1205 = vmatprep.subr.bf16.mxu1 %v1681_v21 }
  0x34   :  { %1124 = vmatpush1.bf16.msra.mxu0 %v1676_v22 }
  0x35   :  { %1206 = vmatpush1.bf16.msra.mxu1 %v1679_v23  ;;  %1125 = vmatprep.subr.bf16.mxu0 %v1684_v24 }
  0x36   :  { %1207 = vmatprep.subr.bf16.mxu1 %v1687_v25 }
  0x38   :  { %1126 = vmatpush1.bf16.msra.mxu0 %v1682_v26 }
  0x39   :  { %1208 = vmatpush1.bf16.msra.mxu1 %v1685_v27  ;;  %1127 = vmatprep.subr.bf16.mxu0 %v1690_v28 }
  0x3a   :  { %1209 = vmatprep.subr.bf16.mxu1 %v1693_v29 }
  0x3c   :  { %1128 = vmatpush1.bf16.msra.mxu0 %v1688_v30 }
  0x3d   :  { %1210 = vmatpush1.bf16.msra.mxu1 %v1691_v31  ;;  %1129 = vmatprep.subr.bf16.mxu0 %v1696_v33 }
  0x3e   :  { %1211 = vmatprep.subr.bf16.mxu1 %v1699_v35  ;;  %v1724_v35 = vld [vmem:[%s2436_s5 + $0x200] ss:$16 sps:$4 sm:$0xff]  }
  0x40   :  { %1130 = vmatpush1.bf16.msra.mxu0 %v1694_v32 }
  0x41   :  { %1212 = vmatpush1.bf16.msra.mxu1 %v1697_v34  ;;  %1131 = vmatprep.subr.bf16.mxu0 %v1702_v36  ;;  %v1727_v36 = vld [vmem:[%s2436_s5 + $0x208] ss:$16 sps:$4 sm:$0xff]  }
  0x42   :  { %1213 = vmatprep.subr.bf16.mxu1 %v1705_v37 }
  0x44   :  { %1132 = vmatpush1.bf16.msra.mxu0 %v1700_v38  ;;  %v1732_v38 = vld [vmem:[%s2436_s5 + $0x224] ss:$16 sps:$4 sm:$0xff]  }
  0x45   :  { %1214 = vmatpush1.bf16.msra.mxu1 %v1703_v39  ;;  %1133 = vmatprep.subr.bf16.mxu0 %v1708_v40  ;;  %v1735_v39 = vld [vmem:[%s2436_s5 + $0x22c] ss:$16 sps:$4 sm:$0xff]  }
  0x46   :  { %1215 = vmatprep.subr.bf16.mxu1 %v1711_v41  ;;  %v1730_v41 = vld [vmem:[%s2436_s5 + $0x220] ss:$16 sps:$4 sm:$0xff]  }
  0x48   :  { %1134 = vmatpush1.bf16.msra.mxu0 %v1706_v42  ;;  %v1733_v42 = vld [vmem:[%s2436_s5 + $0x228] ss:$16 sps:$4 sm:$0xff]  }
  0x49   :  { %1216 = vmatpush1.bf16.msra.mxu1 %v1709_v43  ;;  %1135 = vmatprep.subr.bf16.mxu0 %v1714_v44  ;;  %v1738_v43 = vld [vmem:[%s2436_s5 + $0x244] ss:$16 sps:$4 sm:$0xff]   ;;  %v1741_v44 = vld [vmem:[%s2436_s5 + $0x24c] ss:$16 sps:$4 sm:$0xff]  }
  0x4a   :  { %1217 = vmatprep.subr.bf16.mxu1 %v1717_v45  ;;  %v1736_v45 = vld [vmem:[%s2436_s5 + $0x240] ss:$16 sps:$4 sm:$0xff]  }
  0x4c   :  { %1136 = vmatpush1.bf16.msra.mxu0 %v1712_v46  ;;  %v1739_v46 = vld [vmem:[%s2436_s5 + $0x248] ss:$16 sps:$4 sm:$0xff]  }
  0x4d   :  { %1218 = vmatpush1.bf16.msra.mxu1 %v1715_v47  ;;  %1137 = vmatprep.subr.bf16.mxu0 %v1720_v48  ;;  %v1744_v47 = vld [vmem:[%s2436_s5 + $0x264] ss:$16 sps:$4 sm:$0xff]   ;;  %v1747_v48 = vld [vmem:[%s2436_s5 + $0x26c] ss:$16 sps:$4 sm:$0xff]  }
  0x4e   :  { %1219 = vmatprep.subr.bf16.mxu1 %v1723_v49  ;;  %v1742_v49 = vld [vmem:[%s2436_s5 + $0x260] ss:$16 sps:$4 sm:$0xff]  }
  0x50   :  { %1138 = vmatpush1.bf16.msra.mxu0 %v1718_v50  ;;  %v1745_v50 = vld [vmem:[%s2436_s5 + $0x268] ss:$16 sps:$4 sm:$0xff]  }
  0x51   :  { %1220 = vmatpush1.bf16.msra.mxu1 %v1721_v51  ;;  %1148 = vmatprep.subr.bf16.mxu0 %v1726_v52  ;;  %v1750_v51 = vld [vmem:[%s2436_s5 + $0x284] ss:$16 sps:$4 sm:$0xff]   ;;  %v1753_v52 = vld [vmem:[%s2436_s5 + $0x28c] ss:$16 sps:$4 sm:$0xff]  }
  0x52   :  { %1230 = vmatprep.subr.bf16.mxu1 %v1729_v55  ;;  %v1748_v55 = vld [vmem:[%s2436_s5 + $0x280] ss:$16 sps:$4 sm:$0xff]  }
  0xe4   :  { %v176_v61 = vpop.f32.mrb[0].mxu0  ;;  %v217_v62 = vpop.f32.mrb[0].mxu1 }
  0xe5   :  { %v2060_v63 = vadd.f32 %v176_v61, %v58_v57  ;;  %v2062_v0 = vadd.f32 %v217_v62, %v66_v58  ;;  %v178_v1 = vpop.f32.mrb[1].mxu0  ;;  %v219_v2 = vpop.f32.mrb[1].mxu1 }
  0xe6   :  { %v2064_v3 = vadd.f32 %v178_v1, %v62_v59  ;;  %v180_v5 = vpop.f32.mrb[2].mxu0  ;;  %v221_v6 = vpop.f32.mrb[2].mxu1  ;;  %v2075_v13 = vadd.f32 %v219_v2, %v70_v4  ;;  %v224_v4 = vld [vmem:[%s2434_s3] sm:$0xf] }
  0xe7   :  { %v233_v7 = vmul.f32 %v2060_v63, %v2060_v63  ;;  %v181_v8 = vpop.f32.mrb[3].mxu0  ;;  %v222_v9 = vpop.f32.mrb[3].mxu1  ;;  %v235_v10 = vmul.f32 %v2062_v0, %v2062_v0  ;;  %v225_v5 = vld [vmem:[%s2435_s4] sm:$0xf]  ;;  %v263_v6 = vrot.slane %v224_v4, %v2053_v56 }
  0xe8   :  { %v234_v11 = vmul.f32 %v2064_v3, %v2064_v3  ;;  %v226_v12 = vadd.f32 %v2064_v3, %v2060_v63  ;;  %v236_v18 = vmul.f32 %v2075_v13, %v2075_v13  ;;  %v271_v8 = vrot.slane %v224_v4, %v2058_v60 }
  0xe9   :  { %v267_v9 = vrot.slane %v224_v4, %v2048_v54 }
  0xea   :  { %v227_v14 = vadd.f32 %v226_v12, %v2062_v0  ;;  %v237_v15 = vadd.f32 %v234_v11, %v233_v7  ;;  %v259_v7 = vrot.slane %v224_v4, %v2046_v53  ;;  %v1760_v4 = vld [vmem:[%s2436_s5 + $0x2c0] ss:$16 sps:$4 sm:$0xff]  }
  0xec   :  { %v228_v16 = vadd.f32 %v227_v14, %v2075_v13  ;;  %v238_v17 = vadd.f32 %v237_v15, %v235_v10 }
  0xee   :  { %229 = vadd.xlane.f32.xlu0 %v228_v16  ;;  %v239_v19 = vadd.f32 %v238_v17, %v236_v18  ;;  %v288_v16 = vrot.slane %v225_v5, %v2053_v56  ;;  %v284_v17 = vrot.slane %v225_v5, %v2046_v53  ;;  %v296_v18 = vrot.slane %v225_v5, %v2058_v60 }
  0xf2   :  { %240 = vadd.xlane.f32.xlu0 %v239_v19  ;;  %v292_v19 = vrot.slane %v225_v5, %v2048_v54  ;;  %v1763_v5 = vld [vmem:[%s2436_s5 + $0x2c8] ss:$16 sps:$4 sm:$0xff]  }
 0x17b   :  { %v230_v57 = vpop.xlane.xlu0 %229 }
 0x17c   :  { %v232_v58 = vmul.f32 0.001953125, %v230_v57  ;;  %v1751_v57 = vld [vmem:[%s2436_s5 + $0x288] ss:$16 sps:$4 sm:$0xff]  }
 0x17e   :  { %v243_v61 = vmul.f32 %v232_v58, %v232_v58  ;;  %v245_v10 = vsub.f32 %v2060_v63, %v232_v58  ;;  %v247_v11 = vsub.f32 %v2062_v0, %v232_v58  ;;  %v246_v12 = vsub.f32 %v2064_v3, %v232_v58 }
 0x17f   :  { %v241_v59 = vpop.xlane.xlu0 %240  ;;  %v248_v14 = vsub.f32 %v2075_v13, %v232_v58  ;;  %v1756_v58 = vld [vmem:[%s2436_s5 + $0x2a4] ss:$16 sps:$4 sm:$0xff]  }
 0x180   :  { %v242_v62 = vmul.f32 0.001953125, %v241_v59  ;;  %v1759_v59 = vld [vmem:[%s2436_s5 + $0x2ac] ss:$16 sps:$4 sm:$0xff]  }
 0x182   :  { %v244_v1 = vsub.f32 %v242_v62, %v243_v61  ;;  %v1754_v61 = vld [vmem:[%s2436_s5 + $0x2a0] ss:$16 sps:$4 sm:$0xff]   ;;  %v1757_v62 = vld [vmem:[%s2436_s5 + $0x2a8] ss:$16 sps:$4 sm:$0xff]  }
 0x184   :  { %v249_v2 = vadd.f32 1e-05, %v244_v1  ;;  %v1762_v1 = vld [vmem:[%s2436_s5 + $0x2c4] ss:$16 sps:$4 sm:$0xff]  }
 0x186   :  { %1820 = vrsqrt.f32 %v249_v2  ;;  %v1765_v2 = vld [vmem:[%s2436_s5 + $0x2cc] ss:$16 sps:$4 sm:$0xff]  }
 0x190   :  { %v1821_v15 = vpop.eup %1820 }
 0x191   :  { %v252_v20 = vmul.f32 %v1821_v15, %v246_v12  ;;  %v251_v21 = vmul.f32 %v1821_v15, %v245_v10  ;;  %v254_v22 = vmul.f32 %v1821_v15, %v248_v14  ;;  %v253_v23 = vmul.f32 %v1821_v15, %v247_v11  ;;  %v1774_v10 = vld [vmem:[%s2436_s5 + $0x304] ss:$16 sps:$4 sm:$0xff]   ;;  %v1777_v11 = vld [vmem:[%s2436_s5 + $0x30c] ss:$16 sps:$4 sm:$0xff]   ;;  %v1772_v12 = vld [vmem:[%s2436_s5 + $0x300] ss:$16 sps:$4 sm:$0xff]  }
 0x192   :  { %v1775_v14 = vld [vmem:[%s2436_s5 + $0x308] ss:$16 sps:$4 sm:$0xff]   ;;  %v1780_v15 = vld [vmem:[%s2436_s5 + $0x324] ss:$16 sps:$4 sm:$0xff]  }
 0x193   :  { %v277_v63 = vmul.f32 %v263_v6, %v252_v20  ;;  %v276_v24 = vmul.f32 %v259_v7, %v251_v21  ;;  %v279_v0 = vmul.f32 %v271_v8, %v254_v22  ;;  %v278_v25 = vmul.f32 %v267_v9, %v253_v23  ;;  %v1768_v6 = vld [vmem:[%s2436_s5 + $0x2e4] ss:$16 sps:$4 sm:$0xff]   ;;  %v1771_v7 = vld [vmem:[%s2436_s5 + $0x2ec] ss:$16 sps:$4 sm:$0xff]   ;;  %v1766_v8 = vld [vmem:[%s2436_s5 + $0x2e0] ss:$16 sps:$4 sm:$0xff]  }
 0x194   :  { %v1769_v9 = vld [vmem:[%s2436_s5 + $0x2e8] ss:$16 sps:$4 sm:$0xff]   ;;  %v1789_v20 = vld [vmem:[%s2436_s5 + $0x34c] ss:$16 sps:$4 sm:$0xff]   ;;  %v1784_v21 = vld [vmem:[%s2436_s5 + $0x340] ss:$16 sps:$4 sm:$0xff]  }
 0x195   :  { %v302_v3 = vadd.f32 %v288_v16, %v277_v63  ;;  %v301_v26 = vadd.f32 %v284_v17, %v276_v24  ;;  %v304_v13 = vadd.f32 %v296_v18, %v279_v0  ;;  %v2201_v27 = vadd.f32 %v292_v19, %v278_v25  ;;  %v1783_v16 = vld [vmem:[%s2436_s5 + $0x32c] ss:$16 sps:$4 sm:$0xff]   ;;  %v1778_v17 = vld [vmem:[%s2436_s5 + $0x320] ss:$16 sps:$4 sm:$0xff]   ;;  %v1781_v18 = vld [vmem:[%s2436_s5 + $0x328] ss:$16 sps:$4 sm:$0xff]  }
 0x196   :  { %v1786_v19 = vld [vmem:[%s2436_s5 + $0x344] ss:$16 sps:$4 sm:$0xff]   ;;  %v1787_v22 = vld [vmem:[%s2436_s5 + $0x348] ss:$16 sps:$4 sm:$0xff]   ;;  %v1795_v63 = vld [vmem:[%s2436_s5 + $0x36c] ss:$16 sps:$4 sm:$0xff]  }
 0x197   :  { %v306_v28 = vmul.f32 0.01, %v302_v3  ;;  %v305_v29 = vmul.f32 0.01, %v301_v26  ;;  %v308_v30 = vmul.f32 0.01, %v304_v13 }
 0x198   :  { %v1792_v23 = vld [vmem:[%s2436_s5 + $0x364] ss:$16 sps:$4 sm:$0xff]   ;;  %v1790_v24 = vld [vmem:[%s2436_s5 + $0x360] ss:$16 sps:$4 sm:$0xff]   ;;  %v1793_v0 = vld [vmem:[%s2436_s5 + $0x368] ss:$16 sps:$4 sm:$0xff]  }
 0x199   :  { %v310_v31 = vmax.f32 %v302_v3, %v306_v28  ;;  %v309_v32 = vmax.f32 %v301_v26, %v305_v29  ;;  %v312_v33 = vmax.f32 %v304_v13, %v308_v30  ;;  %v1798_v25 = vld [vmem:[%s2436_s5 + $0x384] ss:$16 sps:$4 sm:$0xff]   ;;  %v1801_v3 = vld [vmem:[%s2436_s5 + $0x38c] ss:$16 sps:$4 sm:$0xff]   ;;  %v1796_v26 = vld [vmem:[%s2436_s5 + $0x380] ss:$16 sps:$4 sm:$0xff]  }
 0x19a   :  { %v1799_v13 = vld [vmem:[%s2436_s5 + $0x388] ss:$16 sps:$4 sm:$0xff]   ;;  %v1804_v28 = vld [vmem:[%s2436_s5 + $0x3a4] ss:$16 sps:$4 sm:$0xff]   ;;  %v1807_v29 = vld [vmem:[%s2436_s5 + $0x3ac] ss:$16 sps:$4 sm:$0xff]  }
 0x19b   :  { %v314_v34 = vpack.c.bf16 %v310_v31, %v310_v31  ;;  %v313_v37 = vpack.c.bf16 %v309_v32, %v309_v32  ;;  %v316_v40 = vpack.c.bf16 %v312_v33, %v312_v33  ;;  %v1802_v30 = vld [vmem:[%s2436_s5 + $0x3a0] ss:$16 sps:$4 sm:$0xff]   ;;  %v1805_v31 = vld [vmem:[%s2436_s5 + $0x3a8] ss:$16 sps:$4 sm:$0xff]   ;;  %v1810_v32 = vld [vmem:[%s2436_s5 + $0x3c4] ss:$16 sps:$4 sm:$0xff]  }
 0x19c   :  { %v1813_v33 = vld [vmem:[%s2436_s5 + $0x3cc] ss:$16 sps:$4 sm:$0xff]  }
 0x19d   :  { %1139 = vmatprep.mubr.bf16.mxu0 %v314_v34  ;;  %1221 = vmatprep.mubr.bf16.mxu1 %v314_v34  ;;  %v1808_v34 = vld [vmem:[%s2436_s5 + $0x3c0] ss:$16 sps:$4 sm:$0xff]  }
 0x19e   :  { %1140 = vmatmul.mubr.bf16.vlgmr.msra.gmra.mrb[4].mxu0 %v313_v37  ;;  %1222 = vmatmul.mubr.bf16.vlgmr.msra.gmra.mrb[4].mxu1 %v313_v37  ;;  %v1819_v37 = vld [vmem:[%s2436_s5 + $0x3ec] ss:$16 sps:$4 sm:$0xff]  }
 0x19f   :  { %1149 = vmatpush1.bf16.msra.mxu0 %v1724_v35  ;;  %1231 = vmatpush1.bf16.msra.mxu1 %v1727_v36  ;;  %v1811_v35 = vld [vmem:[%s2436_s5 + $0x3c8] ss:$16 sps:$4 sm:$0xff]   ;;  %v1816_v36 = vld [vmem:[%s2436_s5 + $0x3e4] ss:$16 sps:$4 sm:$0xff]  }
 0x1a0   :  { %1180 = vmatprep.mubr.bf16.mxu0 %v316_v40  ;;  %1262 = vmatprep.mubr.bf16.mxu1 %v316_v40  ;;  %v1817_v40 = vld [vmem:[%s2436_s5 + $0x3e8] ss:$16 sps:$4 sm:$0xff]  }
 0x1a1   :  { %1150 = vmatprep.subr.bf16.mxu0 %v1732_v38  ;;  %1232 = vmatprep.subr.bf16.mxu1 %v1735_v39  ;;  %v307_v38 = vmul.f32 0.01, %v2201_v27  ;;  %v1814_v39 = vld [vmem:[%s2436_s5 + $0x3e0] ss:$16 sps:$4 sm:$0xff]  }
 0x1a3   :  { %1151 = vmatpush1.bf16.msra.mxu0 %v1730_v41  ;;  %1233 = vmatpush1.bf16.msra.mxu1 %v1733_v42  ;;  %v311_v41 = vmax.f32 %v2201_v27, %v307_v38 }
 0x1a4   :  { %1152 = vmatprep.subr.bf16.mxu0 %v1738_v43  ;;  %1234 = vmatprep.subr.bf16.mxu1 %v1741_v44  ;;  %v445_v43 = vld [vmem:[%s2437_s6] sm:$0xf] }
 0x1a5   :  { %v315_v42 = vpack.c.bf16 %v311_v41, %v311_v41  ;;  %v450_v44 = vrot.slane %v445_v43, %v2046_v53 }
 0x1a7   :  { %1153 = vmatpush1.bf16.msra.mxu0 %v1736_v45  ;;  %1235 = vmatpush1.bf16.msra.mxu1 %v1739_v46  ;;  %v458_v45 = vrot.slane %v445_v43, %v2048_v54  ;;  %v454_v46 = vrot.slane %v445_v43, %v2053_v56 }
 0x1a8   :  { %1154 = vmatprep.subr.bf16.mxu0 %v1744_v47  ;;  %1236 = vmatprep.subr.bf16.mxu1 %v1747_v48 }
 0x1ab   :  { %1155 = vmatpush1.bf16.msra.mxu0 %v1742_v49  ;;  %1237 = vmatpush1.bf16.msra.mxu1 %v1745_v50 }
 0x1ac   :  { %1156 = vmatprep.subr.bf16.mxu0 %v1750_v51  ;;  %1238 = vmatprep.subr.bf16.mxu1 %v1753_v52 }
 0x1af   :  { %1157 = vmatpush1.bf16.msra.mxu0 %v1748_v55  ;;  %1239 = vmatpush1.bf16.msra.mxu1 %v1751_v57  ;;  %v462_v55 = vrot.slane %v445_v43, %v2058_v60 }
 0x1b0   :  { %1158 = vmatprep.subr.bf16.mxu0 %v1756_v58  ;;  %1240 = vmatprep.subr.bf16.mxu1 %v1759_v59 }
 0x1b3   :  { %1159 = vmatpush1.bf16.msra.mxu0 %v1754_v61  ;;  %1241 = vmatpush1.bf16.msra.mxu1 %v1757_v62 }
 0x1b4   :  { %1160 = vmatprep.subr.bf16.mxu0 %v1762_v1  ;;  %1242 = vmatprep.subr.bf16.mxu1 %v1765_v2 }
 0x1b7   :  { %1161 = vmatpush1.bf16.msra.mxu0 %v1760_v4  ;;  %1243 = vmatpush1.bf16.msra.mxu1 %v1763_v5 }
 0x1b8   :  { %1162 = vmatprep.subr.bf16.mxu0 %v1768_v6  ;;  %1244 = vmatprep.subr.bf16.mxu1 %v1771_v7 }
 0x1bb   :  { %1163 = vmatpush1.bf16.msra.mxu0 %v1766_v8  ;;  %1245 = vmatpush1.bf16.msra.mxu1 %v1769_v9 }
 0x1bc   :  { %1164 = vmatprep.subr.bf16.mxu0 %v1774_v10  ;;  %1246 = vmatprep.subr.bf16.mxu1 %v1777_v11 }
 0x1bf   :  { %1165 = vmatpush1.bf16.msra.mxu0 %v1772_v12  ;;  %1247 = vmatpush1.bf16.msra.mxu1 %v1775_v14 }
 0x1c0   :  { %1166 = vmatprep.subr.bf16.mxu0 %v1780_v15  ;;  %1248 = vmatprep.subr.bf16.mxu1 %v1783_v16 }
 0x1c3   :  { %1167 = vmatpush1.bf16.msra.mxu0 %v1778_v17  ;;  %1249 = vmatpush1.bf16.msra.mxu1 %v1781_v18 }
 0x1c4   :  { %1168 = vmatprep.subr.bf16.mxu0 %v1786_v19  ;;  %1250 = vmatprep.subr.bf16.mxu1 %v1789_v20  ;;  %v1271_v20 = vld [vmem:[%s2438_s7] sm:$0xf] }
 0x1c7   :  { %1169 = vmatpush1.bf16.msra.mxu0 %v1784_v21  ;;  %1251 = vmatpush1.bf16.msra.mxu1 %v1787_v22  ;;  %v1272_v21 = vld [vmem:[%s2439_s8] sm:$0xf]  ;;  %v1305_v22 = vrot.slane %v1271_v20, %v2046_v53 }
 0x1c8   :  { %1170 = vmatprep.subr.bf16.mxu0 %v1792_v23  ;;  %1252 = vmatprep.subr.bf16.mxu1 %v1795_v63  ;;  %v1309_v23 = vrot.slane %v1271_v20, %v2053_v56  ;;  %v1313_v63 = vrot.slane %v1271_v20, %v2048_v54 }
 0x1cb   :  { %1171 = vmatpush1.bf16.msra.mxu0 %v1790_v24  ;;  %1253 = vmatpush1.bf16.msra.mxu1 %v1793_v0  ;;  %v1317_v24 = vrot.slane %v1271_v20, %v2058_v60 }
 0x1cc   :  { %1172 = vmatprep.subr.bf16.mxu0 %v1798_v25  ;;  %1254 = vmatprep.subr.bf16.mxu1 %v1801_v3 }
 0x1cf   :  { %1173 = vmatpush1.bf16.msra.mxu0 %v1796_v26  ;;  %1255 = vmatpush1.bf16.msra.mxu1 %v1799_v13 }
 0x1d0   :  { %1174 = vmatprep.subr.bf16.mxu0 %v1804_v28  ;;  %1256 = vmatprep.subr.bf16.mxu1 %v1807_v29  ;;  %v1330_v28 = vrot.slane %v1272_v21, %v2046_v53  ;;  %v1334_v29 = vrot.slane %v1272_v21, %v2053_v56 }
 0x1d3   :  { %1175 = vmatpush1.bf16.msra.mxu0 %v1802_v30  ;;  %1257 = vmatpush1.bf16.msra.mxu1 %v1805_v31  ;;  %v1338_v30 = vrot.slane %v1272_v21, %v2048_v54  ;;  %v1342_v31 = vrot.slane %v1272_v21, %v2058_v60 }
 0x1d4   :  { %1176 = vmatprep.subr.bf16.mxu0 %v1810_v32  ;;  %1258 = vmatprep.subr.bf16.mxu1 %v1813_v33 }
 0x1d7   :  { %1177 = vmatpush1.bf16.msra.mxu0 %v1808_v34  ;;  %1259 = vmatpush1.bf16.msra.mxu1 %v1811_v35 }
 0x1d8   :  { %1178 = vmatprep.subr.bf16.mxu0 %v1816_v36  ;;  %1260 = vmatprep.subr.bf16.mxu1 %v1819_v37 }
 0x1db   :  { %1179 = vmatpush1.bf16.msra.mxu0 %v1814_v39  ;;  %1261 = vmatpush1.bf16.msra.mxu1 %v1817_v40  ;;  %v1359_v40 = vld [vmem:[%s2440_s9] sm:$0xf]  ;;  %s1853_s9 = smov [#allocation3]  }
 0x1dc   :  { %s1444_s23 = sshll.u32 %s1853_s9, 4  ;;  %s1445_s23 = int_to_ptr.vmem [resolvable:$true] %s1444_s23 }
 0x1dd   :  { %s1828_s24 = scalar_lea.vmem %s1445_s23, 16  ;;  %s1832_s25 = scalar_lea.vmem %s1445_s23, 32 }
 0x1de   :  { %1181 = vmatmul.mubr.bf16.vlgmr.msra.gmra.mrb[4].mxu0 %v315_v42  ;;  %1263 = vmatmul.mubr.bf16.vlgmr.msra.gmra.mrb[4].mxu1 %v315_v42  ;;  %p1829_p0 = scmp.ne.s32.totalorder %s1445_s23, %s1828_s24  ;;  %p1833_p1 = scmp.lt.s32.totalorder %s1445_s23, %s1445_s23 }
 0x1df   :  { %p1834_p2 = scmp.lt.s32.totalorder %s1832_s25, %s1828_s24 }
 0x1e1   :  { %p1835_p3 = por %p1834_p2, %p1833_p1 }
 0x1e3   :  { %p1836_p4 = pnand %p1835_p3, %p1829_p0 }
 0x2b1   :  { %v1182_v47 = vpop.f32.mrb[4].mxu0  ;;  %v1264_v48 = vpop.f32.mrb[4].mxu1 }
 0x2b2   :  { %v1597_v49 = vadd.f32 %v1182_v47, %v450_v44  ;;  %v1184_v50 = vpop.f32.mrb[5].mxu0  ;;  %v1266_v27 = vpop.f32.mrb[5].mxu1  ;;  %v1599_v51 = vadd.f32 %v1264_v48, %v458_v45  ;;  %v1364_v45 = vrot.slane %v1359_v40, %v2046_v53 }
 0x2b3   :  { %v1598_v52 = vadd.f32 %v1184_v50, %v454_v46  ;;  %v1186_v57 = vpop.f32.mrb[6].mxu0  ;;  %v1268_v58 = vpop.f32.mrb[6].mxu1  ;;  %v1600_v5 = vadd.f32 %v1266_v27, %v462_v55  ;;  %v1372_v55 = vrot.slane %v1359_v40, %v2048_v54 }
 0x2b4   :  { %v1279_v59 = vmul.f32 %v1597_v49, %v1597_v49  ;;  %v1187_v61 = vpop.f32.mrb[7].mxu0  ;;  %v1269_v62 = vpop.f32.mrb[7].mxu1  ;;  %v1281_v4 = vmul.f32 %v1599_v51, %v1599_v51  ;;  %v1376_v58 = vrot.slane %v1359_v40, %v2058_v60 }
 0x2b5   :  { %v1280_v1 = vmul.f32 %v1598_v52, %v1598_v52  ;;  %v1273_v2 = vadd.f32 %v1598_v52, %v1597_v49  ;;  %v1282_v10 = vmul.f32 %v1600_v5, %v1600_v5 }
 0x2b7   :  { %v1274_v6 = vadd.f32 %v1599_v51, %v1273_v2  ;;  %v1283_v7 = vadd.f32 %v1280_v1, %v1279_v59 }
 0x2b9   :  { %v1275_v8 = vadd.f32 %v1600_v5, %v1274_v6  ;;  %v1284_v9 = vadd.f32 %v1283_v7, %v1281_v4 }
 0x2bb   :  { %1276 = vadd.xlane.f32.xlu1 %v1275_v8  ;;  %v1285_v11 = vadd.f32 %v1284_v9, %v1282_v10 }
 0x2bf   :  { %1286 = vadd.xlane.f32.xlu1 %v1285_v11 }
 0x348   :  { %v1277_v12 = vpop.xlane.xlu1 %1276 }
 0x349   :  { %v1278_v14 = vmul.f32 0.001953125, %v1277_v12 }
 0x34b   :  { %v1289_v16 = vmul.f32 %v1278_v14, %v1278_v14  ;;  %v1291_v0 = vsub.f32 %v1597_v49, %v1278_v14  ;;  %v1292_v25 = vsub.f32 %v1598_v52, %v1278_v14  ;;  %v1293_v3 = vsub.f32 %v1599_v51, %v1278_v14 }
 0x34c   :  { %v1287_v15 = vpop.xlane.xlu1 %1286  ;;  %v1294_v26 = vsub.f32 %v1600_v5, %v1278_v14  ;;  %v1368_v49 = vrot.slane %v1359_v40, %v2053_v56  ;;  %v1596_v5 = vld [vmem:[#allocation2] ss:$0 sm:$0xff] }
 0x34d   :  { %v1288_v17 = vmul.f32 0.001953125, %v1287_v15 }
 0x34f   :  { %v1290_v18 = vsub.f32 %v1288_v17, %v1289_v16 }
 0x351   :  { %v1295_v19 = vadd.f32 1e-05, %v1290_v18 }
 0x353   :  { %1822 = vrsqrt.f32 %v1295_v19 }
 0x35d   :  { %v1823_v13 = vpop.eup %1822 }
 0x35e   :  { %v1297_v32 = vmul.f32 %v1823_v13, %v1291_v0  ;;  %v1298_v33 = vmul.f32 %v1823_v13, %v1292_v25  ;;  %v1299_v34 = vmul.f32 %v1823_v13, %v1293_v3  ;;  %v1300_v35 = vmul.f32 %v1823_v13, %v1294_v26 }
 0x360   :  { %v1322_v36 = vmul.f32 %v1305_v22, %v1297_v32  ;;  %v1323_v37 = vmul.f32 %v1309_v23, %v1298_v33  ;;  %v1324_v38 = vmul.f32 %v1313_v63, %v1299_v34  ;;  %v1325_v39 = vmul.f32 %v1317_v24, %v1300_v35 }
 0x362   :  { %v1347_v41 = vadd.f32 %v1330_v28, %v1322_v36  ;;  %v1348_v42 = vadd.f32 %v1334_v29, %v1323_v37  ;;  %v1349_v43 = vadd.f32 %v1338_v30, %v1324_v38  ;;  %v1350_v44 = vadd.f32 %v1342_v31, %v1325_v39 }
 0x364   :  { %v1351_v46 = vmul.f32 0.01, %v1347_v41  ;;  %v1352_v47 = vmul.f32 0.01, %v1348_v42  ;;  %v1353_v48 = vmul.f32 0.01, %v1349_v43 }
 0x365   :  { %v1354_v50 = vmul.f32 0.01, %v1350_v44 }
 0x366   :  { %v1355_v27 = vmax.f32 %v1347_v41, %v1351_v46  ;;  %v1356_v51 = vmax.f32 %v1348_v42, %v1352_v47  ;;  %v1357_v52 = vmax.f32 %v1349_v43, %v1353_v48 }
 0x367   :  { %v1358_v57 = vmax.f32 %v1350_v44, %v1354_v50 }
 0x368   :  { %v1381_v59 = vmul.f32 %v1364_v45, %v1355_v27  ;;  %v1382_v61 = vmul.f32 %v1368_v49, %v1356_v51  ;;  %v1383_v62 = vmul.f32 %v1372_v55, %v1357_v52 }
 0x369   :  { %v1384_v2 = vmul.f32 %v1376_v58, %v1358_v57 }
 0x36a   :  { %v1385_v1 = vadd.f32 %v1382_v61, %v1381_v59 }
 0x36c   :  { %v1386_v53 = vadd.f32 %v1385_v1, %v1383_v62 }
 0x36e   :  { %v1387_v4 = vadd.f32 %v1386_v53, %v1384_v2 }
 0x370   :  { %1388 = vadd.xlane.f32.xlu0 %v1387_v4 }
 0x3fd   :  { %v1389_v6 = vpop.xlane.xlu0 %1388 }
 0x3fe   :  { %v1397_v56 = vadd.f32 %v1596_v5, %v1389_v6 }
 0x400   :  { %1398 = vxpose.xlu1.b32.start.end [1/1] (short) (narrow) %v1397_v56, 8 }
 0x480   :  { %v1414_v7 = vpop.trf.xlu1 }
 0x481   :  { %v1430_v8 = vsub.f32 0.0, %v1414_v7 }
 0x483   :  { %v1431_v9 = vmul.f32 1.442695, %v1430_v8 }
 0x485   :  { %1824 = vpow2.f32 %v1431_v9 }
 0x48f   :  { %v1825_v54 = vpop.eup %1824 }
 0x490   :  { %v1433_v10 = vadd.f32 1.0, %v1825_v54 }
 0x492   :  { %1826 = vrcp.f32 %v1433_v10 }
 0x49c   :  { %v1827_v60 = vpop.eup %1826 }
 0x49d   :  { %1437 = vst.msk [vmem:[#allocation3] sm:$0x1] %vm1436_vm2, %v1827_v60 }
 0x49e   :  { %1839 = shalt.err (!%p1836_p4)
}
 0x49f   :  { %s1840_s10 = scalar_lea.hbm %s2442_s11, 16 }
 0x4a0   :  { %p1841_p5 = scmp.ne.s32.totalorder %s2442_s11, %s1840_s10  ;;  %p1844_p6 = scmp.lt.u32.totalorder %s1840_s10, %s2442_s11 }
 0x4a2   :  { %p1846_p7 = pnand %p1844_p6, %p1841_p5 }
 0x4a4   :  { %1849 = shalt.err (!%p1846_p7)
}
 0x4a5   :  { %1447 = dma.vmem_to_hbm [thread:$0]  %s1445_s23, 16, %s2442_s11, [#allocation4]  }
 0x4a6   :  { %1850 = dma.done.wait [#allocation4], 16  }
 0x4a7   :  { %1851 = vsyncadd [#allocation4], 4294967280 }
 0x4a8   :  { %1451 = vsyncpa [#allocation4], 1 }

</bundles_post_ra>
